<compile_context>
chip_gen: v6e
topology: v6e:2x2x1
jax: 0.10.0
libtpu: 0.0.40
codegen_flags: <defaults>
</compile_context>

<pallas_src>
import jax
import jax.numpy as jnp
from jax import lax
from jax.experimental import pallas as pl
from jax.experimental.pallas import tpu as pltpu

LANE = 128
SUBLANE = 8
MAX_BLOCK_ROWS = 4096          # (4096, 128) f32 tile = 2 MiB/input/step
VMEM_LIMIT_BYTES = 32 * 1024 * 1024
NEG_PAD = -1.0e30              # logit pad value: sigmoid -> 0, bce -> 0 (with t = 0)


def dice_bce_loss(inputs, targets, smooth=1.0):
    """inputs: raw logits (any shape, e.g. NCHW); targets: same shape, in [0,1]."""
    n = int(inputs.size)
    x = inputs.reshape(-1)
    t = targets.reshape(-1)

    # Row alignment accounts for sub-32-bit sublane packing (bf16 -> 16 rows, ...).
    pack_x = max(1, 4 // jnp.dtype(x.dtype).itemsize)
    pack_t = max(1, 4 // jnp.dtype(t.dtype).itemsize)
    row_align = SUBLANE * max(pack_x, pack_t)
    chunk = row_align * LANE

    padded = pl.cdiv(n, chunk) * chunk
    if padded != n:
        # Pad logits with a huge negative value and targets with 0:
        #   p = sigmoid(-1e30) = 0, p*t = 0, t = 0, bce = 0  -> zero contribution,
        # so no masking and no wrapper-side correction is needed for these.
        x = jnp.pad(x, (0, padded - n), constant_values=NEG_PAD)
        t = jnp.pad(t, (0, padded - n))

    rows = padded // LANE                      # multiple of row_align
    block_rows = min(MAX_BLOCK_ROWS, rows)     # 4096 or full extent
    num_blocks = pl.cdiv(rows, block_rows)
    tail_rows = rows % block_rows              # static; 0 => every block is full
    has_tail = tail_rows != 0

    x2 = x.reshape(rows, LANE)
    t2 = t.reshape(rows, LANE)

    in_spec = pl.BlockSpec((block_rows, LANE), lambda i: (i, 0))
    out_spec = pl.BlockSpec((4, SUBLANE, LANE), lambda i: (0, 0, 0))

    k = block_rows // SUBLANE

    def kernel(x_ref, t_ref, out_ref):
        i = pl.program_id(0)

        @pl.when(i == 0)
        def _init():
            out_ref[...] = jnp.zeros_like(out_ref)

        def tsum(v):
            # (block_rows, 128) -> (8, 128): pure sublane-aligned VALU adds,
            # no cross-lane traffic.
            return jnp.sum(v.reshape(k, SUBLANE, LANE), axis=0)

        def accumulate(xv, tv):
            # shared-exp sigmoid + logits-stable BCE:
            #   z = e^{-|x|}; sigmoid(x) = 1/(1+z) (x>=0) or z/(1+z) (x<0)
            #   bce = max(x,0) - x*t + log1p(z)
            z = jnp.exp(-jnp.abs(xv))
            inv = pl.reciprocal(1.0 + z)               # EUP slot, exact
            p = jnp.where(xv >= 0, inv, z * inv)
            bce = jnp.maximum(xv, 0.0) - xv * tv + jnp.log1p(z)
            out_ref[0] += tsum(p * tv)                 # intersection
            out_ref[1] += tsum(p)                      # sum(p)
            out_ref[2] += tsum(tv)                     # sum(t)
            out_ref[3] += tsum(bce)                    # sum(bce)

        xv = x_ref[...].astype(jnp.float32)
        tv = t_ref[...].astype(jnp.float32)

        if has_tail:
            # Only the very last block is ragged; keep the mask work off the
            # hot path by gating it behind pl.when.
            @pl.when(i < num_blocks - 1)
            def _full():
                accumulate(xv, tv)

            @pl.when(i == num_blocks - 1)
            def _tail():
                row = lax.broadcasted_iota(jnp.int32, xv.shape, 0)
                valid = row < tail_rows                # static threshold, no overflow
                # Sanitize out-of-bounds garbage rows to the "zero-contribution"
                # pad values (kills any NaNs before the transcendentals).
                accumulate(jnp.where(valid, xv, jnp.float32(NEG_PAD)),
                           jnp.where(valid, tv, 0.0))
        else:
            accumulate(xv, tv)

    partials = pl.pallas_call(
        kernel,
        out_shape=jax.ShapeDtypeStruct((4, SUBLANE, LANE), jnp.float32),
        grid_spec=pltpu.PrefetchScalarGridSpec(
            num_scalar_prefetch=0,
            grid=(num_blocks,),
            in_specs=[in_spec, in_spec],
            out_specs=out_spec,
        ),
        compiler_params=pltpu.CompilerParams(
            dimension_semantics=("arbitrary",),
            vmem_limit_bytes=VMEM_LIMIT_BYTES,
        ),
    )(x2, t2)

    # Final cross-lane/sublane reduction + epilogue (tiny, done once in XLA).
    sums = jnp.sum(partials, axis=(1, 2))              # [inter, sum_p, sum_t, bce_sum]
    intersection = sums[0]
    sum_p = sums[1]
    sum_t = sums[2]
    bce_mean = sums[3] / jnp.float32(n)
    dice_loss = 1.0 - (2.0 * intersection + smooth) / (sum_p + sum_t + smooth)
    return bce_mean + dice_loss


if __name__ == "__main__":
    key = jax.random.PRNGKey(0)
    k1, k2 = jax.random.split(key)

    # NCHW logits and binary targets, small shapes
    inputs = jax.random.normal(k1, (2, 4, 16, 16), dtype=jnp.float32)
    targets = (jax.random.uniform(k2, (2, 4, 16, 16)) > 0.5).astype(jnp.float32)

    loss = dice_bce_loss(inputs, targets)
    jax.block_until_ready(loss)

    # pure-JAX reference (PyTorch semantics: sigmoid -> BCE mean + dice)
    p = jax.nn.sigmoid(inputs).reshape(-1)
    t = targets.reshape(-1)
    inter = jnp.sum(p * t)
    dice_ref = 1.0 - (2.0 * inter + 1.0) / (jnp.sum(p) + jnp.sum(t) + 1.0)
    bce_ref = jnp.mean(-(t * jnp.log(p) + (1.0 - t) * jnp.log(1.0 - p)))
    ref = bce_ref + dice_ref
    assert jnp.allclose(loss, ref, rtol=1e-5, atol=1e-5), (loss, ref)

    print("KERNEL_OK")
</pallas_src>

<mosaic_0001>
module attributes {stable_mosaic.version = 11 : i64} {
  func.func @kernel(%arg0: i32, %arg1: memref<16x128xf32, #tpu.memory_space<vmem>>, %arg2: memref<16x128xf32, #tpu.memory_space<vmem>>, %arg3: memref<4x8x128xf32, #tpu.memory_space<vmem>>) attributes {dimension_semantics = [#tpu.dimension_semantics<arbitrary>], iteration_bounds = array<i64: 1>, scalar_prefetch = 0 : i64, scratch_operands = 0 : i64, tpu.core_type = #tpu.core_type<tc>, window_params = [{transform_indices = @transform_0, window_bounds = array<i64: 16, 128>}, {transform_indices = @transform_1, window_bounds = array<i64: 16, 128>}, {pipeline_mode = #tpu.pipeline_mode<synchronous>, transform_indices = @transform_2, window_bounds = array<i64: 4, 8, 128>}]} {
    %c0_i32 = arith.constant 0 : i32
    %0 = arith.cmpi eq, %arg0, %c0_i32 : i32
    %1 = arith.extui %0 : i1 to i32
    %c0_i32_0 = arith.constant 0 : i32
    %2 = arith.cmpi ne, %1, %c0_i32_0 : i32
    scf.if %2 {
      %cst_32 = arith.constant 0.000000e+00 : f32
      %55 = vector.broadcast %cst_32 : f32 to vector<4x8x128xf32>
      %c0_33 = arith.constant 0 : index
      %c0_34 = arith.constant 0 : index
      %c0_35 = arith.constant 0 : index
      %56 = vector.load %arg3[%c0_33, %c0_34, %c0_35] : memref<4x8x128xf32, #tpu.memory_space<vmem>>, vector<4x8x128xf32>
      tpu.vector_store %arg3[%c0_33, %c0_34, %c0_35], %55 {strides = array<i32>} : memref<4x8x128xf32, #tpu.memory_space<vmem>>, vector<4x8x128xf32>,
    } else {
    }
    %c0 = arith.constant 0 : index
    %c0_1 = arith.constant 0 : index
    %3 = vector.load %arg1[%c0, %c0_1] : memref<16x128xf32, #tpu.memory_space<vmem>>, vector<16x128xf32>
    %c0_2 = arith.constant 0 : index
    %c0_3 = arith.constant 0 : index
    %4 = vector.load %arg2[%c0_2, %c0_3] : memref<16x128xf32, #tpu.memory_space<vmem>>, vector<16x128xf32>
    %5 = math.absf %3 : vector<16x128xf32>
    %cst = arith.constant 0.000000e+00 : f32
    %6 = vector.broadcast %cst : f32 to vector<16x128xf32>
    %7 = arith.subf %6, %5 : vector<16x128xf32>
    %8 = math.exp %7 : vector<16x128xf32>
    %cst_4 = arith.constant 1.000000e+00 : f32
    %9 = vector.broadcast %cst_4 : f32 to vector<16x128xf32>
    %10 = arith.addf %9, %8 : vector<16x128xf32>
    %11 = tpu.reciprocal %10 : vector<16x128xf32> -> vector<16x128xf32>
    %cst_5 = arith.constant 0.000000e+00 : f32
    %12 = vector.broadcast %cst_5 : f32 to vector<16x128xf32>
    %13 = arith.cmpf oge, %3, %12 : vector<16x128xf32>
    %14 = arith.mulf %8, %11 : vector<16x128xf32>
    %15 = arith.select %13, %11, %14 : vector<16x128xi1>, vector<16x128xf32>
    %cst_6 = arith.constant 0.000000e+00 : f32
    %16 = vector.broadcast %cst_6 : f32 to vector<16x128xf32>
    %17 = arith.maximumf %3, %16 : vector<16x128xf32>
    %18 = arith.mulf %3, %4 : vector<16x128xf32>
    %19 = arith.subf %17, %18 : vector<16x128xf32>
    %20 = math.log1p %8 : vector<16x128xf32>
    %21 = arith.addf %19, %20 : vector<16x128xf32>
    %c0_7 = arith.constant 0 : index
    %c0_8 = arith.constant 0 : index
    %c0_9 = arith.constant 0 : index
    %22 = vector.load %arg3[%c0_7, %c0_8, %c0_9] : memref<4x8x128xf32, #tpu.memory_space<vmem>>, vector<1x8x128xf32>
    %23 = vector.shape_cast %22 : vector<1x8x128xf32> to vector<8x128xf32>
    %24 = arith.mulf %15, %4 : vector<16x128xf32>
    %25 = vector.shape_cast %24 : vector<16x128xf32> to vector<2x8x128xf32>
    %cst_10 = arith.constant dense<0.000000e+00> : vector<8x128xf32>
    %26 = vector.multi_reduction <add>, %25, %cst_10 [0] : vector<2x8x128xf32> to vector<8x128xf32>
    %27 = arith.addf %23, %26 : vector<8x128xf32>
    %c0_11 = arith.constant 0 : index
    %c0_12 = arith.constant 0 : index
    %c0_13 = arith.constant 0 : index
    %28 = vector.load %arg3[%c0_11, %c0_12, %c0_13] : memref<4x8x128xf32, #tpu.memory_space<vmem>>, vector<1x8x128xf32>
    %29 = vector.shape_cast %28 : vector<1x8x128xf32> to vector<8x128xf32>
    %30 = vector.shape_cast %27 : vector<8x128xf32> to vector<1x8x128xf32>
    tpu.vector_store %arg3[%c0_11, %c0_12, %c0_13], %30 {strides = array<i32>} : memref<4x8x128xf32, #tpu.memory_space<vmem>>, vector<1x8x128xf32>,
    %c1 = arith.constant 1 : index
    %c0_14 = arith.constant 0 : index
    %c0_15 = arith.constant 0 : index
    %31 = vector.load %arg3[%c1, %c0_14, %c0_15] : memref<4x8x128xf32, #tpu.memory_space<vmem>>, vector<1x8x128xf32>
    %32 = vector.shape_cast %31 : vector<1x8x128xf32> to vector<8x128xf32>
    %33 = vector.shape_cast %15 : vector<16x128xf32> to vector<2x8x128xf32>
    %cst_16 = arith.constant dense<0.000000e+00> : vector<8x128xf32>
    %34 = vector.multi_reduction <add>, %33, %cst_16 [0] : vector<2x8x128xf32> to vector<8x128xf32>
    %35 = arith.addf %32, %34 : vector<8x128xf32>
    %c1_17 = arith.constant 1 : index
    %c0_18 = arith.constant 0 : index
    %c0_19 = arith.constant 0 : index
    %36 = vector.load %arg3[%c1_17, %c0_18, %c0_19] : memref<4x8x128xf32, #tpu.memory_space<vmem>>, vector<1x8x128xf32>
    %37 = vector.shape_cast %36 : vector<1x8x128xf32> to vector<8x128xf32>
    %38 = vector.shape_cast %35 : vector<8x128xf32> to vector<1x8x128xf32>
    tpu.vector_store %arg3[%c1_17, %c0_18, %c0_19], %38 {strides = array<i32>} : memref<4x8x128xf32, #tpu.memory_space<vmem>>, vector<1x8x128xf32>,
    %c2 = arith.constant 2 : index
    %c0_20 = arith.constant 0 : index
    %c0_21 = arith.constant 0 : index
    %39 = vector.load %arg3[%c2, %c0_20, %c0_21] : memref<4x8x128xf32, #tpu.memory_space<vmem>>, vector<1x8x128xf32>
    %40 = vector.shape_cast %39 : vector<1x8x128xf32> to vector<8x128xf32>
    %41 = vector.shape_cast %4 : vector<16x128xf32> to vector<2x8x128xf32>
    %cst_22 = arith.constant dense<0.000000e+00> : vector<8x128xf32>
    %42 = vector.multi_reduction <add>, %41, %cst_22 [0] : vector<2x8x128xf32> to vector<8x128xf32>
    %43 = arith.addf %40, %42 : vector<8x128xf32>
    %c2_23 = arith.constant 2 : index
    %c0_24 = arith.constant 0 : index
    %c0_25 = arith.constant 0 : index
    %44 = vector.load %arg3[%c2_23, %c0_24, %c0_25] : memref<4x8x128xf32, #tpu.memory_space<vmem>>, vector<1x8x128xf32>
    %45 = vector.shape_cast %44 : vector<1x8x128xf32> to vector<8x128xf32>
    %46 = vector.shape_cast %43 : vector<8x128xf32> to vector<1x8x128xf32>
    tpu.vector_store %arg3[%c2_23, %c0_24, %c0_25], %46 {strides = array<i32>} : memref<4x8x128xf32, #tpu.memory_space<vmem>>, vector<1x8x128xf32>,
    %c3 = arith.constant 3 : index
    %c0_26 = arith.constant 0 : index
    %c0_27 = arith.constant 0 : index
    %47 = vector.load %arg3[%c3, %c0_26, %c0_27] : memref<4x8x128xf32, #tpu.memory_space<vmem>>, vector<1x8x128xf32>
    %48 = vector.shape_cast %47 : vector<1x8x128xf32> to vector<8x128xf32>
    %49 = vector.shape_cast %21 : vector<16x128xf32> to vector<2x8x128xf32>
    %cst_28 = arith.constant dense<0.000000e+00> : vector<8x128xf32>
    %50 = vector.multi_reduction <add>, %49, %cst_28 [0] : vector<2x8x128xf32> to vector<8x128xf32>
    %51 = arith.addf %48, %50 : vector<8x128xf32>
    %c3_29 = arith.constant 3 : index
    %c0_30 = arith.constant 0 : index
    %c0_31 = arith.constant 0 : index
    %52 = vector.load %arg3[%c3_29, %c0_30, %c0_31] : memref<4x8x128xf32, #tpu.memory_space<vmem>>, vector<1x8x128xf32>
    %53 = vector.shape_cast %52 : vector<1x8x128xf32> to vector<8x128xf32>
    %54 = vector.shape_cast %51 : vector<8x128xf32> to vector<1x8x128xf32>
    tpu.vector_store %arg3[%c3_29, %c0_30, %c0_31], %54 {strides = array<i32>} : memref<4x8x128xf32, #tpu.memory_space<vmem>>, vector<1x8x128xf32>,
    return
  }
  func.func @transform_0(%arg0: i32) -> (i32, i32) {
    %c0_i32 = arith.constant 0 : i32
    %c0_i32_0 = arith.constant 0 : i32
    return %arg0, %c0_i32 : i32, i32
  }
  func.func @transform_1(%arg0: i32) -> (i32, i32) {
    %c0_i32 = arith.constant 0 : i32
    %c0_i32_0 = arith.constant 0 : i32
    return %arg0, %c0_i32 : i32, i32
  }
  func.func @transform_2(%arg0: i32) -> (i32, i32, i32) {
    %c0_i32 = arith.constant 0 : i32
    %c0_i32_0 = arith.constant 0 : i32
    %c0_i32_1 = arith.constant 0 : i32
    %c0_i32_2 = arith.constant 0 : i32
    return %c0_i32, %c0_i32_0, %c0_i32_1 : i32, i32, i32
  }
}

</mosaic_0001>

<bundles_post_ra>
// kernel: tpu_custom_call.1
= control target key start
LH: loop header
LB: loop body
LE: loop exit
PB: predicated region body
PF: predicated region fallthrough
CT: control target
= control target key end

     0   :  { %7 = vsyncpa [#allocation3], 0  ;;  %s257_s0 = inlined_call_operand.hbm [shape: f32[16,128], index: 0, kind: input, shape index: {}]   ;;  %s258_s1 = inlined_call_operand.hbm [shape: f32[16,128], index: 1, kind: input, shape index: {}]   ;;  %s259_s2 = inlined_call_operand.hbm [shape: f32[4,8,128], index: 2, kind: output, shape index: {}]  }
   0x1   :  { %8 = vsyncpa [#allocation6], 0 }
   0x2   :  { %9 = vsyncpa [#allocation4], 0  ;;  %s219_s9 = smov [#allocation2]  }
   0x3   :  { %s15_s10 = sshll.u32 %s219_s9, 4  ;;  %s16_s10 = int_to_ptr.vmem [resolvable:$true] %s15_s10 }
   0x4   :  { %s161_s11 = scalar_lea.vmem %s16_s10, 256  ;;  %p166_p1 = scmp.lt.s32.totalorder %s16_s10, %s16_s10 }
   0x5   :  { %p162_p0 = scmp.ne.s32.totalorder %s16_s10, %s161_s11  ;;  %p167_p2 = scmp.lt.s32.totalorder %s161_s11, %s161_s11 }
   0x7   :  { %p168_p3 = por %p167_p2, %p166_p1 }
   0x9   :  { %p169_p4 = pnand %p168_p3, %p162_p0 }
   0xb   :  { %172 = shalt.err (!%p169_p4)
}
   0xc   :  { %s220_s12 = smov 128   ;;  %s221_s13 = smov 8  }
   0xd   :  { %21 = dma.hbm_to_vmem [thread:$0]  %s257_s0, 256, %s16_s10, [#allocation3], %s220_s12, %s220_s12, %s221_s13  }
   0xe   :  { %s222_s16 = smov [#allocation5]  }
   0xf   :  { %s27_s17 = sshll.u32 %s222_s16, 4  ;;  %s28_s17 = int_to_ptr.vmem [resolvable:$true] %s27_s17 }
  0x10   :  { %s181_s18 = scalar_lea.vmem %s28_s17, 256  ;;  %p186_p6 = scmp.lt.s32.totalorder %s28_s17, %s28_s17 }
  0x11   :  { %p182_p5 = scmp.ne.s32.totalorder %s28_s17, %s181_s18  ;;  %p187_p7 = scmp.lt.s32.totalorder %s181_s18, %s181_s18 }
  0x13   :  { %p188_p8 = por %p187_p7, %p186_p6 }
  0x15   :  { %p189_p9 = pnand %p188_p8, %p182_p5 }
  0x17   :  { %192 = shalt.err (!%p189_p9)
}
  0x18   :  { %33 = dma.hbm_to_vmem [thread:$0]  %s258_s1, 256, %s28_s17, [#allocation6], %s220_s12, %s220_s12, %s221_s13  }
  0x19   :  { %213 = dma.done.wait [#allocation3], 256  }
  0x1a   :  { %214 = vsyncadd [#allocation3], 4294967040 }
  0x1b   :  { %215 = dma.done.wait [#allocation6], 256  }
  0x1c   :  { %216 = vsyncadd [#allocation6], 4294967040  ;;  %v48_v0 = vld [vmem:[#allocation2] sm:$0xff]  ;;  %v49_v1 = vld [vmem:[#allocation2 + $0x8] sm:$0xff]  ;;  %s223_s0 = smov [#allocation7]  }
  0x1d   :  { %v50_v2 = vld [vmem:[#allocation5] sm:$0xff]  ;;  %v51_v3 = vld [vmem:[#allocation5 + $0x8] sm:$0xff]  ;;  %v52_v4 = vand.u32 2147483647, %v48_v0  ;;  %v53_v5 = vand.u32 2147483647, %v49_v1 }
  0x1e   :  { %v109_v6 = vadd.f32 %v51_v3, %v50_v2  ;;  %v70_v18 = vmax.f32 %v48_v0, 0.0  ;;  %v72_v19 = vmul.f32 %v50_v2, %v48_v0  ;;  %v71_v22 = vmax.f32 %v49_v1, 0.0  ;;  %s122_s1 = sshll.u32 %s223_s0, 4  ;;  %s123_s1 = int_to_ptr.vmem [resolvable:$true] %s122_s1 }
  0x1f   :  { %v54_v7 = vsub.f32 0.0, %v52_v4  ;;  %v55_v8 = vsub.f32 0.0, %v53_v5  ;;  %v73_v23 = vmul.f32 %v51_v3, %v49_v1  ;;  %vm64_vm0 = vcmp.ge.f32.partialorder %v48_v0, 0.0  ;;  %s193_s21 = scalar_lea.vmem %s123_s1, 512  ;;  %p198_p11 = scmp.lt.s32.totalorder %s123_s1, %s123_s1 }
  0x20   :  { %111 = vst [vmem:[#allocation7 + $0x10] sm:$0xff] %v109_v6  ;;  %vm65_vm1 = vcmp.ge.f32.partialorder %v49_v1, 0.0  ;;  %v74_v31 = vsub.f32 %v70_v18, %v72_v19  ;;  %p194_p10 = scmp.ne.s32.totalorder %s123_s1, %s193_s21  ;;  %p199_p12 = scmp.lt.s32.totalorder %s193_s21, %s193_s21 }
  0x21   :  { %v56_v9 = vmul.f32 1.442695, %v54_v7  ;;  %v58_v10 = vmul.f32 1.442695, %v55_v8  ;;  %v75_v35 = vsub.f32 %v71_v22, %v73_v23 }
  0x22   :  { %p200_p13 = por %p199_p12, %p198_p11 }
  0x23   :  { %141 = vpow2.f32 %v56_v9 }
  0x24   :  { %143 = vpow2.f32 %v58_v10  ;;  %p201_p0 = pnand %p200_p13, %p194_p10 }
  0x30   :  { %v142_v11 = vpop.eup %141 }
  0x31   :  { %v144_v12 = vpop.eup %143  ;;  %v60_v13 = vadd.f32 1.0, %v142_v11  ;;  %v79_v15 = vmul.f32 -0.5, %v142_v11  ;;  %v82_v20 = vand.u32 2147483647, %v142_v11 }
  0x32   :  { %v61_v14 = vadd.f32 1.0, %v144_v12  ;;  %v88_v16 = vmul.f32 -0.5, %v144_v12  ;;  %v91_v24 = vand.u32 2147483647, %v144_v12 }
  0x33   :  { %145 = vrcp.f32 %v60_v13  ;;  %v80_v17 = vadd.f32 1.0, %v79_v15  ;;  %vm83_vm2 = vcmp.lt.f32.partialorder %v82_v20, 0.0004427343 }
  0x34   :  { %147 = vrcp.f32 %v61_v14  ;;  %v89_v21 = vadd.f32 1.0, %v88_v16  ;;  %vm92_vm3 = vcmp.lt.f32.partialorder %v91_v24, 0.0004427343 }
  0x35   :  { %149 = vlog2.f32 %v60_v13  ;;  %v81_v28 = vmul.f32 %v142_v11, %v80_v17 }
  0x36   :  { %151 = vlog2.f32 %v61_v14  ;;  %v90_v32 = vmul.f32 %v144_v12, %v89_v21 }
  0x40   :  { %v146_v25 = vpop.eup %145 }
  0x41   :  { %v148_v26 = vpop.eup %147  ;;  %v66_v27 = vmul.f32 %v146_v25, %v142_v11 }
  0x42   :  { %v150_v29 = vpop.eup %149  ;;  %v67_v30 = vmul.f32 %v148_v26, %v144_v12 }
  0x43   :  { %v152_v33 = vpop.eup %151  ;;  %v68_v34 = vsel %vm64_vm0, %v146_v25, %v66_v27  ;;  %v78_v36 = vmul.f32 0.6931472, %v150_v29 }
  0x44   :  { %v69_v37 = vsel %vm65_vm1, %v148_v26, %v67_v30  ;;  %v97_v38 = vmul.f32 %v68_v34, %v50_v2  ;;  %v87_v39 = vmul.f32 0.6931472, %v152_v33 }
  0x45   :  { %v98_v40 = vmul.f32 %v69_v37, %v51_v3  ;;  %v104_v41 = vadd.f32 %v69_v37, %v68_v34  ;;  %v84_v42 = vsel %vm83_vm2, %v81_v28, %v78_v36 }
  0x46   :  { %v93_v43 = vsel %vm92_vm3, %v90_v32, %v87_v39  ;;  %v94_v44 = vadd.f32 %v84_v42, %v74_v31 }
  0x47   :  { %v99_v45 = vadd.f32 %v98_v40, %v97_v38  ;;  %v95_v46 = vadd.f32 %v93_v43, %v75_v35  ;;  %106 = vst [vmem:[#allocation7 + $0x8] sm:$0xff] %v104_v41 }
  0x49   :  { %v114_v47 = vadd.f32 %v95_v46, %v94_v44  ;;  %101 = vst [vmem:[#allocation7] sm:$0xff] %v99_v45 }
  0x4b   :  { %116 = vst [vmem:[#allocation7 + $0x18] sm:$0xff] %v114_v47 }
  0x4c   :  { %204 = shalt.err (!%p201_p0)
}
  0x4d   :  { %128 = dma.vmem_to_hbm [thread:$0]  %s123_s1, 512, %s259_s2, [#allocation4], %s220_s12, %s220_s12, %s221_s13  }
  0x4e   :  { %217 = dma.done.wait [#allocation4], 512  }
  0x4f   :  { %218 = vsyncadd [#allocation4], 4294966784 }
  0x50   :  { %132 = vsyncpa [#allocation3], 1 }
  0x51   :  { %133 = vsyncpa [#allocation6], 1 }
  0x52   :  { %134 = vsyncpa [#allocation4], 1 }

</bundles_post_ra>
